<compile_context>
chip_gen: v5e
topology: v5e:2x2
jax: 0.10.0
libtpu: 0.0.40
codegen_flags: <defaults>
</compile_context>

<pallas_src>
import math

import jax
import jax.numpy as jnp
from jax import lax
from jax.experimental import pallas as pl
from jax.experimental.pallas import tpu as pltpu

AFFINE = False
BASE_WIDTH = [32, 48, 64, 80]
MAX_WIDTH = 224
OVERLAP = 1.0
BN_EPS = 1e-5

LANE = 128          # TPU lane width: fused output channels are padded to a multiple of this
NEG_PAD = -1e30     # finite stand-in for -inf spatial padding (never wins a pooling window)


# ----------------------------- Pallas kernels ------------------------------ #

def conv_stats_kernel(p_ref, w_ref, y_ref, s_ref):
    """Row tile of the im2col conv matmul + per-tile BatchNorm partial sums.

    p_ref: (TR, K)  bf16 im2col patches (rows ordered (ho, wo, n))
    w_ref: (K, Cp)  bf16 fused projected weights (all candidates, zero-padded lanes)
    y_ref: (TR, Cp) f32  raw conv output tile
    s_ref: (1, 2, Cp) f32 per-tile [sum; sum of squares] over rows (one-pass stats)
    """
    y = jnp.dot(p_ref[...], w_ref[...], preferred_element_type=jnp.float32)  # MXU, f32 acc
    y_ref[...] = y
    s_ref[0, 0:1, :] = jnp.sum(y, axis=0, keepdims=True)
    s_ref[0, 1:2, :] = jnp.sum(y * y, axis=0, keepdims=True)


def bn_relu_pool_kernel(x_ref, bn_ref, o_ref):
    """Fused BatchNorm(affine=False, training stats) + ReLU + MaxPool2d(3, stride 2, pad 1).

    x_ref : (Hout+1, 2, Wout+1, 2*N, CT) f32 -- raw conv output, spatially padded with
            NEG_PAD and reshaped to (index, parity) along H and (index, parity*N) along W,
            so every stride-2 pooling window read is a plain static slice (9 full-tile loads).
    bn_ref: (2, CT) f32 rows = (mean, inv_std)
    o_ref : (Hout, Wout, N, CT)

    Max-pooling commutes with the monotone per-channel BN+ReLU map, so we pool the raw
    conv values first (8 maxima) and normalize once on the pooled result.
    """
    Hout, Wout, N, _ = o_ref.shape
    m = None
    for dh in range(3):
        ha, hb = dh // 2, dh % 2
        for dw in range(3):
            wa, wb = dw // 2, dw % 2
            v = x_ref[ha:ha + Hout, hb, wa:wa + Wout, wb * N:(wb + 1) * N, :]
            m = v if m is None else jnp.maximum(m, v)
    mean = bn_ref[0:1, :]
    inv_std = bn_ref[1:2, :]
    o_ref[...] = jnp.maximum((m - mean) * inv_std, 0.0)


# ------------------------------ glue / wrapper ------------------------------ #

def _round_up(a, b):
    return (a + b - 1) // b * b


def _im2col(x, Ho, Wo):
    """(N, 3, H, W) -> (R, 147) patches, rows ordered (ho, wo, n), cols (cin, kh, kw).

    Row order (ho, wo, n) lets the conv output reshape straight to (Ho, Wo, N, C) with no
    transpose before the pooling kernel.
    """
    N, Cin, H, W = x.shape
    xp = jnp.pad(x, ((0, 0), (0, 0), (3, 3), (3, 3)))
    cols = []
    for kh in range(7):
        for kw in range(7):
            cols.append(lax.slice(
                xp, (0, 0, kh, kw),
                (N, Cin, kh + 2 * (Ho - 1) + 1, kw + 2 * (Wo - 1) + 1),
                (1, 1, 2, 2)))
    p = jnp.stack(cols, axis=2)                  # (N, Cin, 49, Ho, Wo), 49 ordered (kh, kw)
    p = p.transpose(3, 4, 0, 1, 2)               # (Ho, Wo, N, Cin, 49)
    return p.reshape(N * Ho * Wo, Cin * 49)      # (R, K)


@jax.jit
def _fused_first_block(x, meta, Ps, Qs):
    """Run conv+BN+ReLU+maxpool for all candidates in Ps/Qs fused along output channels.

    Returns pooled activations of shape (Hout, Wout, N, Cp) with Cp = round_up(sum widths, 128).
    """
    N, Cin, H, W = x.shape
    Ho = (H + 2 * 3 - 7) // 2 + 1
    Wo = (W + 2 * 3 - 7) // 2 + 1
    Hout = (Ho + 2 - 3) // 2 + 1
    Wout = (Wo + 2 - 3) // 2 + 1
    R = N * Ho * Wo
    K = Cin * 49

    # ---- projected weights for every requested candidate, fused on the output-channel
    #      axis and zero-padded to a lane-dense multiple of 128 (extra channels are
    #      discarded after pooling; BN of an all-zero channel is well defined via eps).
    # TODO(synk): `project()` helper is not in the provided snippet; standard APS einsum assumed.
    w_blocks = [jnp.einsum('ijhw,ix,jy->xyhw', meta, P, Q).reshape(P.shape[1], K)
                for P, Q in zip(Ps, Qs)]
    w_cat = jnp.concatenate(w_blocks, axis=0)                      # (Ctot, K)
    Ctot = w_cat.shape[0]
    Cp = _round_up(Ctot, LANE)
    w_mat = jnp.pad(w_cat, ((0, Cp - Ctot), (0, 0))).T.astype(jnp.bfloat16)   # (K, Cp)

    # ---- im2col patches shared by ALL candidates (bf16 halves their HBM traffic).
    # TODO(synk): build the im2col tiles inside the conv kernel (manual DMA from padded x
    # kept in HBM) to avoid materializing the 49x-inflated patches array in HBM.
    patches = _im2col(x, Ho, Wo).astype(jnp.bfloat16)              # (R, K)
    TR = _round_up(R, 8) if R <= 1024 else 512                     # row tile (multiple of 8)
    Rp = _round_up(R, TR)
    patches = jnp.pad(patches, ((0, Rp - R), (0, 0)))              # zero rows: 0 contribution
    nt = Rp // TR

    # ---- kernel A: row-tiled conv matmul + one-pass per-tile BN partial statistics.
    y, part = pl.pallas_call(
        conv_stats_kernel,
        out_shape=(jax.ShapeDtypeStruct((Rp, Cp), jnp.float32),
                   jax.ShapeDtypeStruct((nt, 2, Cp), jnp.float32)),
        grid=(nt,),
        in_specs=[pl.BlockSpec((TR, K), lambda i: (i, 0)),
                  pl.BlockSpec((K, Cp), lambda i: (0, 0))],
        out_specs=(pl.BlockSpec((TR, Cp), lambda i: (i, 0)),
                   pl.BlockSpec((1, 2, Cp), lambda i: (i, 0, 0))),
        compiler_params=pltpu.CompilerParams(
            dimension_semantics=("parallel",),
            vmem_limit_bytes=32 * 1024 * 1024),
    )(patches, w_mat)

    # ---- finalize BatchNorm statistics over ALL (real) rows: training mode, biased var.
    tot = jnp.sum(part, axis=0)                                    # (2, Cp)
    mean = tot[0] / R
    var = jnp.maximum(tot[1] / R - mean * mean, 0.0)
    bn = jnp.stack([mean, lax.rsqrt(var + BN_EPS)], axis=0)        # (2, Cp)

    # ---- layout plumbing for the fused BN+ReLU+maxpool kernel: pad spatially with a very
    #      negative value and split H/W into (index, parity) -- a free row-major reshape --
    #      so stride-2 window reads inside the kernel are plain slices.
    y = y[:R].reshape(Ho, Wo, N, Cp)
    ypad = jnp.pad(y, ((1, 2 * Hout + 1 - Ho), (1, 2 * Wout + 1 - Wo), (0, 0), (0, 0)),
                   constant_values=NEG_PAD)                        # (2*(Hout+1), 2*(Wout+1), N, Cp)
    yr = ypad.reshape(Hout + 1, 2, Wout + 1, 2 * N, Cp)

    pooled = pl.pallas_call(
        bn_relu_pool_kernel,
        out_shape=jax.ShapeDtypeStruct((Hout, Wout, N, Cp), jnp.float32),
        grid=(Cp // LANE,),
        in_specs=[pl.BlockSpec((Hout + 1, 2, Wout + 1, 2 * N, LANE),
                               lambda c: (0, 0, 0, 0, c)),
                  pl.BlockSpec((2, LANE), lambda c: (0, c))],
        out_specs=pl.BlockSpec((Hout, Wout, N, LANE), lambda c: (0, 0, 0, c)),
        compiler_params=pltpu.CompilerParams(
            dimension_semantics=("parallel",),
            vmem_limit_bytes=32 * 1024 * 1024),
    )(yr, bn)
    return pooled                                                  # (Hout, Wout, N, Cp)


class FirstBlockPallas:
    """Deterministic re-implementation of FirstBlock (params built in-script)."""

    def __init__(self, key, planes=MAX_WIDTH, candidate_width=BASE_WIDTH, overlap=OVERLAP):
        self.planes = planes
        self.candidate_width = candidate_width
        k_meta, k_p = jax.random.split(key)

        # conv0_kernel: kaiming_uniform_(a=sqrt(5)) on (planes, 3, 7, 7)
        fan_in = 3 * 7 * 7
        gain = math.sqrt(2.0 / (1.0 + 5.0))
        bound = gain * math.sqrt(3.0 / fan_in)
        self.meta = jax.random.uniform(
            k_meta, (planes, 3, 7, 7), jnp.float32, minval=-bound, maxval=bound)

        # TProjection P/Q per candidate width
        self.Ps, self.Qs = [], []
        keys = jax.random.split(k_p, len(candidate_width))
        for i, cand in enumerate(candidate_width):
            cum_c = 0
            for j in range(i):
                cum_c += int((1.0 - overlap) * candidate_width[j])
            P0 = jnp.zeros((planes, cand), jnp.float32)
            P0 = P0.at[cum_c:cum_c + cand, :].set(jnp.eye(cand, dtype=jnp.float32))
            P = P0 + 0.01 * jax.random.normal(keys[i], (planes, cand), jnp.float32)
            Q = jnp.eye(3, dtype=jnp.float32)   # cin == cin_p == 3 -> exact identity (no noise)
            self.Ps.append(P)
            self.Qs.append(Q)

    def __call__(self, x, arch):
        arch = [int(a) for a in arch]
        uniq = sorted(set(arch))
        offsets, off = {}, 0
        for c in uniq:
            wc = self.Ps[c].shape[1]
            offsets[c] = (off, wc)
            off += wc

        pooled = _fused_first_block(
            x, self.meta,
            tuple(self.Ps[c] for c in uniq), tuple(self.Qs[c] for c in uniq))

        outs = []
        for c in arch:
            o, wc = offsets[c]
            outs.append(jnp.transpose(pooled[:, :, :, o:o + wc], (2, 3, 0, 1)))  # NCHW
        return outs


# ----------------------------- pure-JAX references -------------------------- #

def _reference_branch(x, meta, P, Q, cast_bf16):
    """PyTorch-faithful reference (f32 or with matmul inputs rounded to bf16)."""
    w = jnp.einsum('ijhw,ix,jy->xyhw', meta, P, Q)
    if cast_bf16:
        xl, wl = x.astype(jnp.bfloat16), w.astype(jnp.bfloat16)
    else:
        xl, wl = x, w
    y = lax.conv_general_dilated(
        xl, wl, window_strides=(2, 2), padding=((3, 3), (3, 3)),
        dimension_numbers=('NCHW', 'OIHW', 'NCHW'),
        precision=lax.Precision.HIGHEST,
        preferred_element_type=jnp.float32)
    mean = jnp.mean(y, axis=(0, 2, 3), keepdims=True)
    var = jnp.mean(jnp.square(y - mean), axis=(0, 2, 3), keepdims=True)
    y = jnp.maximum((y - mean) * lax.rsqrt(var + BN_EPS), 0.0)
    return lax.reduce_window(
        y, -jnp.inf, lax.max,
        window_dimensions=(1, 1, 3, 3), window_strides=(1, 1, 2, 2),
        padding=((0, 0), (0, 0), (1, 1), (1, 1)))


if __name__ == "__main__":
    key = jax.random.PRNGKey(0)
    k_param, k_x = jax.random.split(key)

    block = FirstBlockPallas(k_param)
    x = jax.random.normal(k_x, (2, 3, 16, 16), jnp.float32)   # NCHW
    arch = [0, 2]                                             # candidate widths 32 and 64

    outs = block(x, arch)
    outs = [jax.block_until_ready(o) for o in outs]

    for a, o in zip(arch, outs):
        # tight check against a matched-precision (bf16 matmul inputs, f32 accumulate) reference
        ref_bf16 = _reference_branch(x, block.meta, block.Ps[a], block.Qs[a], cast_bf16=True)
        # sanity check against the full-f32 PyTorch-faithful reference (bf16 rounding tolerance)
        ref_f32 = _reference_branch(x, block.meta, block.Ps[a], block.Qs[a], cast_bf16=False)
        assert o.shape == ref_f32.shape, (o.shape, ref_f32.shape)
        err_b = float(jnp.max(jnp.abs(o - ref_bf16)))
        err_f = float(jnp.max(jnp.abs(o - ref_f32)))
        assert jnp.allclose(o, ref_bf16, rtol=2e-3, atol=2e-3), err_b
        assert jnp.allclose(o, ref_f32, rtol=3e-2, atol=3e-2), err_f

    print("KERNEL_OK")
</pallas_src>

<mosaic_0001>
module attributes {stable_mosaic.version = 11 : i64} {
  func.func @conv_stats_kernel(%arg0: i32, %arg1: memref<128x147xbf16, #tpu.memory_space<vmem>>, %arg2: memref<147x128xbf16, #tpu.memory_space<vmem>>, %arg3: memref<128x128xf32, #tpu.memory_space<vmem>>, %arg4: memref<1x2x128xf32, #tpu.memory_space<vmem>>) attributes {dimension_semantics = [#tpu.dimension_semantics<parallel>], iteration_bounds = array<i64: 1>, scalar_prefetch = 0 : i64, scratch_operands = 0 : i64, tpu.core_type = #tpu.core_type<tc>, window_params = [{transform_indices = @transform_0, window_bounds = array<i64: 128, 147>}, {pipeline_mode = #tpu.pipeline_mode<synchronous>, transform_indices = @transform_1, window_bounds = array<i64: 147, 128>}, {transform_indices = @transform_2, window_bounds = array<i64: 128, 128>}, {transform_indices = @transform_3, window_bounds = array<i64: 1, 2, 128>}]} {
    %c0 = arith.constant 0 : index
    %c0_0 = arith.constant 0 : index
    %0 = vector.load %arg1[%c0, %c0_0] : memref<128x147xbf16, #tpu.memory_space<vmem>>, vector<128x147xbf16>
    %c0_1 = arith.constant 0 : index
    %c0_2 = arith.constant 0 : index
    %1 = vector.load %arg2[%c0_1, %c0_2] : memref<147x128xbf16, #tpu.memory_space<vmem>>, vector<147x128xbf16>
    %cst = arith.constant dense<0.000000e+00> : vector<128x128xf32>
    %2 = tpu.matmul %0, %1, %cst {dimension_numbers = #tpu.dot_dimension_numbers<[1], [0], [0], [1], [0, 0, 1, 1], [], []>} : vector<128x147xbf16>, vector<147x128xbf16>, vector<128x128xf32> -> vector<128x128xf32>
    %c0_3 = arith.constant 0 : index
    %c0_4 = arith.constant 0 : index
    %3 = vector.load %arg3[%c0_3, %c0_4] : memref<128x128xf32, #tpu.memory_space<vmem>>, vector<128x128xf32>
    tpu.vector_store %arg3[%c0_3, %c0_4], %2 {strides = array<i32>} : memref<128x128xf32, #tpu.memory_space<vmem>>, vector<128x128xf32>,
    %cst_5 = arith.constant dense<0.000000e+00> : vector<128xf32>
    %4 = vector.multi_reduction <add>, %2, %cst_5 [0] : vector<128x128xf32> to vector<128xf32>
    %5 = vector.shape_cast %4 : vector<128xf32> to vector<1x128xf32>
    %c0_6 = arith.constant 0 : index
    %c0_7 = arith.constant 0 : index
    %c0_8 = arith.constant 0 : index
    %6 = vector.load %arg4[%c0_6, %c0_7, %c0_8] : memref<1x2x128xf32, #tpu.memory_space<vmem>>, vector<1x1x128xf32>
    %7 = vector.shape_cast %6 : vector<1x1x128xf32> to vector<1x128xf32>
    %8 = vector.shape_cast %5 : vector<1x128xf32> to vector<1x1x128xf32>
    tpu.vector_store %arg4[%c0_6, %c0_7, %c0_8], %8 {strides = array<i32>} : memref<1x2x128xf32, #tpu.memory_space<vmem>>, vector<1x1x128xf32>,
    %9 = arith.mulf %2, %2 : vector<128x128xf32>
    %cst_9 = arith.constant dense<0.000000e+00> : vector<128xf32>
    %10 = vector.multi_reduction <add>, %9, %cst_9 [0] : vector<128x128xf32> to vector<128xf32>
    %11 = vector.shape_cast %10 : vector<128xf32> to vector<1x128xf32>
    %c0_10 = arith.constant 0 : index
    %c1 = arith.constant 1 : index
    %c0_11 = arith.constant 0 : index
    %12 = vector.load %arg4[%c0_10, %c1, %c0_11] : memref<1x2x128xf32, #tpu.memory_space<vmem>>, vector<1x1x128xf32>
    %13 = vector.shape_cast %12 : vector<1x1x128xf32> to vector<1x128xf32>
    %14 = vector.shape_cast %11 : vector<1x128xf32> to vector<1x1x128xf32>
    tpu.vector_store %arg4[%c0_10, %c1, %c0_11], %14 {strides = array<i32>} : memref<1x2x128xf32, #tpu.memory_space<vmem>>, vector<1x1x128xf32>,
    return
  }
  func.func @transform_0(%arg0: i32) -> (i32, i32) {
    %c0_i32 = arith.constant 0 : i32
    %c0_i32_0 = arith.constant 0 : i32
    return %arg0, %c0_i32 : i32, i32
  }
  func.func @transform_1(%arg0: i32) -> (i32, i32) {
    %c0_i32 = arith.constant 0 : i32
    %c0_i32_0 = arith.constant 0 : i32
    %c0_i32_1 = arith.constant 0 : i32
    return %c0_i32, %c0_i32_0 : i32, i32
  }
  func.func @transform_2(%arg0: i32) -> (i32, i32) {
    %c0_i32 = arith.constant 0 : i32
    %c0_i32_0 = arith.constant 0 : i32
    return %arg0, %c0_i32 : i32, i32
  }
  func.func @transform_3(%arg0: i32) -> (i32, i32, i32) {
    %c0_i32 = arith.constant 0 : i32
    %c0_i32_0 = arith.constant 0 : i32
    %c0_i32_1 = arith.constant 0 : i32
    return %arg0, %c0_i32, %c0_i32_0 : i32, i32, i32
  }
}

module attributes {stable_mosaic.version = 11 : i64} {
  func.func @bn_relu_pool_kernel(%arg0: i32, %arg1: memref<5x2x5x4x128xf32, #tpu.memory_space<vmem>>, %arg2: memref<2x128xf32, #tpu.memory_space<vmem>>, %arg3: memref<4x4x2x128xf32, #tpu.memory_space<vmem>>) attributes {dimension_semantics = [#tpu.dimension_semantics<parallel>], iteration_bounds = array<i64: 1>, scalar_prefetch = 0 : i64, scratch_operands = 0 : i64, tpu.core_type = #tpu.core_type<tc>, window_params = [{transform_indices = @transform_0, window_bounds = array<i64: 5, 2, 5, 4, 128>}, {transform_indices = @transform_1, window_bounds = array<i64: 2, 128>}, {transform_indices = @transform_2, window_bounds = array<i64: 4, 4, 2, 128>}]} {
    %c0 = arith.constant 0 : index
    %c0_0 = arith.constant 0 : index
    %c0_1 = arith.constant 0 : index
    %c0_2 = arith.constant 0 : index
    %c0_3 = arith.constant 0 : index
    %0 = vector.load %arg1[%c0, %c0_0, %c0_1, %c0_2, %c0_3] : memref<5x2x5x4x128xf32, #tpu.memory_space<vmem>>, vector<4x1x4x2x128xf32>
    %1 = vector.shape_cast %0 : vector<4x1x4x2x128xf32> to vector<4x4x2x128xf32>
    %c0_4 = arith.constant 0 : index
    %c0_5 = arith.constant 0 : index
    %c0_6 = arith.constant 0 : index
    %c2 = arith.constant 2 : index
    %c0_7 = arith.constant 0 : index
    %2 = vector.load %arg1[%c0_4, %c0_5, %c0_6, %c2, %c0_7] : memref<5x2x5x4x128xf32, #tpu.memory_space<vmem>>, vector<4x1x4x2x128xf32>
    %3 = vector.shape_cast %2 : vector<4x1x4x2x128xf32> to vector<4x4x2x128xf32>
    %4 = arith.maximumf %1, %3 : vector<4x4x2x128xf32>
    %c0_8 = arith.constant 0 : index
    %c0_9 = arith.constant 0 : index
    %c1 = arith.constant 1 : index
    %c0_10 = arith.constant 0 : index
    %c0_11 = arith.constant 0 : index
    %5 = vector.load %arg1[%c0_8, %c0_9, %c1, %c0_10, %c0_11] : memref<5x2x5x4x128xf32, #tpu.memory_space<vmem>>, vector<4x1x4x2x128xf32>
    %6 = vector.shape_cast %5 : vector<4x1x4x2x128xf32> to vector<4x4x2x128xf32>
    %7 = arith.maximumf %4, %6 : vector<4x4x2x128xf32>
    %c0_12 = arith.constant 0 : index
    %c1_13 = arith.constant 1 : index
    %c0_14 = arith.constant 0 : index
    %c0_15 = arith.constant 0 : index
    %c0_16 = arith.constant 0 : index
    %8 = vector.load %arg1[%c0_12, %c1_13, %c0_14, %c0_15, %c0_16] : memref<5x2x5x4x128xf32, #tpu.memory_space<vmem>>, vector<4x1x4x2x128xf32>
    %9 = vector.shape_cast %8 : vector<4x1x4x2x128xf32> to vector<4x4x2x128xf32>
    %10 = arith.maximumf %7, %9 : vector<4x4x2x128xf32>
    %c0_17 = arith.constant 0 : index
    %c1_18 = arith.constant 1 : index
    %c0_19 = arith.constant 0 : index
    %c2_20 = arith.constant 2 : index
    %c0_21 = arith.constant 0 : index
    %11 = vector.load %arg1[%c0_17, %c1_18, %c0_19, %c2_20, %c0_21] : memref<5x2x5x4x128xf32, #tpu.memory_space<vmem>>, vector<4x1x4x2x128xf32>
    %12 = vector.shape_cast %11 : vector<4x1x4x2x128xf32> to vector<4x4x2x128xf32>
    %13 = arith.maximumf %10, %12 : vector<4x4x2x128xf32>
    %c0_22 = arith.constant 0 : index
    %c1_23 = arith.constant 1 : index
    %c1_24 = arith.constant 1 : index
    %c0_25 = arith.constant 0 : index
    %c0_26 = arith.constant 0 : index
    %14 = vector.load %arg1[%c0_22, %c1_23, %c1_24, %c0_25, %c0_26] : memref<5x2x5x4x128xf32, #tpu.memory_space<vmem>>, vector<4x1x4x2x128xf32>
    %15 = vector.shape_cast %14 : vector<4x1x4x2x128xf32> to vector<4x4x2x128xf32>
    %16 = arith.maximumf %13, %15 : vector<4x4x2x128xf32>
    %c1_27 = arith.constant 1 : index
    %c0_28 = arith.constant 0 : index
    %c0_29 = arith.constant 0 : index
    %c0_30 = arith.constant 0 : index
    %c0_31 = arith.constant 0 : index
    %17 = vector.load %arg1[%c1_27, %c0_28, %c0_29, %c0_30, %c0_31] : memref<5x2x5x4x128xf32, #tpu.memory_space<vmem>>, vector<4x1x4x2x128xf32>
    %18 = vector.shape_cast %17 : vector<4x1x4x2x128xf32> to vector<4x4x2x128xf32>
    %19 = arith.maximumf %16, %18 : vector<4x4x2x128xf32>
    %c1_32 = arith.constant 1 : index
    %c0_33 = arith.constant 0 : index
    %c0_34 = arith.constant 0 : index
    %c2_35 = arith.constant 2 : index
    %c0_36 = arith.constant 0 : index
    %20 = vector.load %arg1[%c1_32, %c0_33, %c0_34, %c2_35, %c0_36] : memref<5x2x5x4x128xf32, #tpu.memory_space<vmem>>, vector<4x1x4x2x128xf32>
    %21 = vector.shape_cast %20 : vector<4x1x4x2x128xf32> to vector<4x4x2x128xf32>
    %22 = arith.maximumf %19, %21 : vector<4x4x2x128xf32>
    %c1_37 = arith.constant 1 : index
    %c0_38 = arith.constant 0 : index
    %c1_39 = arith.constant 1 : index
    %c0_40 = arith.constant 0 : index
    %c0_41 = arith.constant 0 : index
    %23 = vector.load %arg1[%c1_37, %c0_38, %c1_39, %c0_40, %c0_41] : memref<5x2x5x4x128xf32, #tpu.memory_space<vmem>>, vector<4x1x4x2x128xf32>
    %24 = vector.shape_cast %23 : vector<4x1x4x2x128xf32> to vector<4x4x2x128xf32>
    %25 = arith.maximumf %22, %24 : vector<4x4x2x128xf32>
    %c0_42 = arith.constant 0 : index
    %c0_43 = arith.constant 0 : index
    %26 = vector.load %arg2[%c0_42, %c0_43] : memref<2x128xf32, #tpu.memory_space<vmem>>, vector<1x128xf32>
    %c1_44 = arith.constant 1 : index
    %c0_45 = arith.constant 0 : index
    %27 = vector.load %arg2[%c1_44, %c0_45] : memref<2x128xf32, #tpu.memory_space<vmem>>, vector<1x128xf32>
    %28 = vector.shape_cast %26 : vector<1x128xf32> to vector<1x1x1x128xf32>
    %29 = vector.broadcast %28 : vector<1x1x1x128xf32> to vector<4x4x2x128xf32>
    %30 = arith.subf %25, %29 : vector<4x4x2x128xf32>
    %31 = vector.shape_cast %27 : vector<1x128xf32> to vector<1x1x1x128xf32>
    %32 = vector.broadcast %31 : vector<1x1x1x128xf32> to vector<4x4x2x128xf32>
    %33 = arith.mulf %30, %32 : vector<4x4x2x128xf32>
    %cst = arith.constant 0.000000e+00 : f32
    %34 = vector.broadcast %cst : f32 to vector<4x4x2x128xf32>
    %35 = arith.maximumf %33, %34 : vector<4x4x2x128xf32>
    %c0_46 = arith.constant 0 : index
    %c0_47 = arith.constant 0 : index
    %c0_48 = arith.constant 0 : index
    %c0_49 = arith.constant 0 : index
    %36 = vector.load %arg3[%c0_46, %c0_47, %c0_48, %c0_49] : memref<4x4x2x128xf32, #tpu.memory_space<vmem>>, vector<4x4x2x128xf32>
    tpu.vector_store %arg3[%c0_46, %c0_47, %c0_48, %c0_49], %35 {strides = array<i32>} : memref<4x4x2x128xf32, #tpu.memory_space<vmem>>, vector<4x4x2x128xf32>,
    return
  }
  func.func @transform_0(%arg0: i32) -> (i32, i32, i32, i32, i32) {
    %c0_i32 = arith.constant 0 : i32
    %c0_i32_0 = arith.constant 0 : i32
    %c0_i32_1 = arith.constant 0 : i32
    %c0_i32_2 = arith.constant 0 : i32
    %c0_i32_3 = arith.constant 0 : i32
    return %c0_i32, %c0_i32_0, %c0_i32_1, %c0_i32_2, %arg0 : i32, i32, i32, i32, i32
  }
  func.func @transform_1(%arg0: i32) -> (i32, i32) {
    %c0_i32 = arith.constant 0 : i32
    %c0_i32_0 = arith.constant 0 : i32
    return %c0_i32, %arg0 : i32, i32
  }
  func.func @transform_2(%arg0: i32) -> (i32, i32, i32, i32) {
    %c0_i32 = arith.constant 0 : i32
    %c0_i32_0 = arith.constant 0 : i32
    %c0_i32_1 = arith.constant 0 : i32
    %c0_i32_2 = arith.constant 0 : i32
    return %c0_i32, %c0_i32_0, %c0_i32_1, %arg0 : i32, i32, i32, i32
  }
}

</mosaic_0001>

<bundles_post_ra>
// kernel: _fused_first_block.2
= control target key start
LH: loop header
LB: loop body
LE: loop exit
PB: predicated region body
PF: predicated region fallthrough
CT: control target
= control target key end

     0   :  { %vm203_vm0 = vcmask 1040384   ;;  %vm204_vm1 = vcmask 1041408   ;;  %v536_v2 = vmov 65535   ;;  %vm178_vm2 = vcmask 154624   ;;  %s757_s1 = inlined_call_operand.vmem [shape: bf16[147,128], index: 1, kind: input, shape index: {}]   ;;  %s758_s0 = inlined_call_operand.vmem [shape: bf16[128,147], index: 0, kind: input, shape index: {}]   ;;  %s759_s2 = inlined_call_operand.vmem [shape: f32[128,128], index: 2, kind: output, shape index: {0}]   ;;  %s760_s3 = inlined_call_operand.vmem [shape: f32[1,2,128], index: 3, kind: output, shape index: {1}]  }
   0x1   :  { %v523_v0 = vld [vmem:[%s757_s1 + $0x38] sm:$0xff]  ;;  %v48_v1 = vld [vmem:[%s757_s1 + $0x48] sm:$0x3]  ;;  %v205_v3 = vsel %vm203_vm0, 4294967295, %v536_v2  ;;  %v522_v5 = vld [vmem:[%s757_s1 + $0x30] sm:$0xff] }
   0x2   :  { %v158_v4 = vunpack.c.l.b16 %v48_v1  ;;  %210 = vmatpush.bf16.msra.mxu0 %v523_v0  ;;  %525 = vmatpush.bf16.msra.mxu2 %v523_v0  ;;  %v206_v6 = vsel %vm204_vm1, %v205_v3, 0  ;;  %v521_v9 = vld [vmem:[%s757_s1 + $0x28] sm:$0xff]  ;;  %v524_v10 = vld [vmem:[%s757_s1 + $0x40] sm:$0xff]  ;;  %v519_v15 = vld [vmem:[%s757_s1 + $0x18] sm:$0xff] }
   0x3   :  { %v500_v11 = vld [vmem:[%s758_s0 + $0x4] sm:$0xf]  ;;  %v396_v12 = vld [vmem:[%s758_s0 + $0x8] sm:$0xf0]  ;;  %v510_v16 = vld [vmem:[%s758_s0 + $0x54] sm:$0xf] }
   0x4   :  { %v168_v7 = vpack.c.b16 %v158_v4, %v158_v4  ;;  %v399_v13 = vor.u32 %v500_v11, %v396_v12  ;;  %v520_v14 = vld [vmem:[%s757_s1 + $0x20] sm:$0xff]  ;;  %v436_v17 = vld [vmem:[%s758_s0 + $0x58] sm:$0xf0]  ;;  %v518_v18 = vld [vmem:[%s757_s1 + $0x10] sm:$0xff] }
   0x5   :  { %v439_v19 = vor.u32 %v510_v16, %v436_v17  ;;  %v517_v20 = vld [vmem:[%s757_s1 + $0x8] sm:$0xff]  ;;  %v502_v21 = vld [vmem:[%s758_s0 + $0x14] sm:$0xf]  ;;  %v404_v22 = vld [vmem:[%s758_s0 + $0x18] sm:$0xf0] }
   0x6   :  { %v208_v8 = vand.u32 %v206_v6, %v168_v7  ;;  %211 = vmatpush.bf16.msra.mxu0 %v522_v5  ;;  %526 = vmatpush.bf16.msra.mxu2 %v522_v5  ;;  %v407_v23 = vor.u32 %v502_v21, %v404_v22  ;;  %v516_v24 = vld [vmem:[%s757_s1] sm:$0xff]  ;;  %v501_v26 = vld [vmem:[%s758_s0 + $0x4] sm:$0xf0]  ;;  %v444_v32 = vld [vmem:[%s758_s0 + $0x68] sm:$0xf0] }
   0x7   :  { %v394_v25 = vld [vmem:[%s758_s0] sm:$0xf]  ;;  %v509_v28 = vld [vmem:[%s758_s0 + $0x44] sm:$0xf0]  ;;  %v512_v31 = vld [vmem:[%s758_s0 + $0x64] sm:$0xf] }
   0x8   :  { %265 = vmatpush.bf16.msra.mxu1 %v208_v8  ;;  %533 = vmatpush.bf16.msra.mxu3 %v208_v8  ;;  %v426_v27 = vld [vmem:[%s758_s0 + $0x40] sm:$0xf]  ;;  %v395_v29 = vor.u32 %v501_v26, %v394_v25  ;;  %v447_v33 = vor.u32 %v512_v31, %v444_v32  ;;  %v504_v34 = vld [vmem:[%s758_s0 + $0x24] sm:$0xf]  ;;  %v412_v35 = vld [vmem:[%s758_s0 + $0x28] sm:$0xf0] }
   0x9   :  { %v427_v30 = vor.u32 %v509_v28, %v426_v27  ;;  %v415_v36 = vor.u32 %v504_v34, %v412_v35  ;;  %v402_v37 = vld [vmem:[%s758_s0 + $0x10] sm:$0xf]  ;;  %v503_v38 = vld [vmem:[%s758_s0 + $0x14] sm:$0xf0]  ;;  %v514_v43 = vld [vmem:[%s758_s0 + $0x74] sm:$0xf] }
   0xa   :  { %212 = vmatpush.bf16.msra.mxu0 %v521_v9  ;;  %527 = vmatpush.bf16.msra.mxu2 %v521_v9  ;;  %v434_v39 = vld [vmem:[%s758_s0 + $0x50] sm:$0xf]  ;;  %v511_v40 = vld [vmem:[%s758_s0 + $0x54] sm:$0xf0]  ;;  %v403_v41 = vor.u32 %v503_v38, %v402_v37  ;;  %v452_v44 = vld [vmem:[%s758_s0 + $0x78] sm:$0xf0] }
   0xb   :  { %v435_v42 = vor.u32 %v511_v40, %v434_v39  ;;  %v455_v45 = vor.u32 %v514_v43, %v452_v44  ;;  %v506_v46 = vld [vmem:[%s758_s0 + $0x34] sm:$0xf]  ;;  %v420_v47 = vld [vmem:[%s758_s0 + $0x38] sm:$0xf0]  ;;  %v410_v49 = vld [vmem:[%s758_s0 + $0x20] sm:$0xf] }
   0xc   :  { %266 = vmatpush.bf16.msra.mxu1 %v524_v10  ;;  %534 = vmatpush.bf16.msra.mxu3 %v524_v10  ;;  %v423_v48 = vor.u32 %v506_v46, %v420_v47  ;;  %v505_v50 = vld [vmem:[%s758_s0 + $0x24] sm:$0xf0]  ;;  %v442_v51 = vld [vmem:[%s758_s0 + $0x60] sm:$0xf]  ;;  %v508_v55 = vld [vmem:[%s758_s0 + $0x44] sm:$0xf] }
   0xd   :  { %v513_v52 = vld [vmem:[%s758_s0 + $0x64] sm:$0xf0]  ;;  %v411_v53 = vor.u32 %v505_v50, %v410_v49  ;;  %v428_v56 = vld [vmem:[%s758_s0 + $0x48] sm:$0xf0]  ;;  %v418_v58 = vld [vmem:[%s758_s0 + $0x30] sm:$0xf] }
   0xe   :  { %213 = vmatpush.bf16.msra.mxu0 %v520_v14  ;;  %528 = vmatpush.bf16.msra.mxu2 %v520_v14  ;;  %v443_v54 = vor.u32 %v513_v52, %v442_v51  ;;  %v431_v57 = vor.u32 %v508_v55, %v428_v56  ;;  %v507_v59 = vld [vmem:[%s758_s0 + $0x34] sm:$0xf0]  ;;  %v450_v60 = vld [vmem:[%s758_s0 + $0x70] sm:$0xf] }
   0xf   :  { %492 = vmatmul.msk.bf16.vlgmr.msra.gmra.mxu1 %vm178_vm2, %v399_v13  ;;  %497 = vmatmul.msk.bf16.vlgmr.msra.gmra.mxu3 %vm178_vm2, %v439_v19  ;;  %v515_v61 = vld [vmem:[%s758_s0 + $0x74] sm:$0xf0]  ;;  %v419_v62 = vor.u32 %v507_v59, %v418_v58 }
  0x10   :  { %v451_v63 = vor.u32 %v515_v61, %v450_v60 }
  0x12   :  { %214 = vmatpush.bf16.msra.mxu0 %v519_v15  ;;  %529 = vmatpush.bf16.msra.mxu2 %v519_v15 }
  0x16   :  { %215 = vmatpush.bf16.msra.mxu0 %v518_v18  ;;  %530 = vmatpush.bf16.msra.mxu2 %v518_v18 }
  0x1a   :  { %216 = vmatpush.bf16.msra.mxu0 %v517_v20  ;;  %531 = vmatpush.bf16.msra.mxu2 %v517_v20 }
  0x1e   :  { %217 = vmatpush.bf16.msra.mxu0 %v516_v24  ;;  %532 = vmatpush.bf16.msra.mxu2 %v516_v24 }
  0x1f   :  { %493 = vmatmul.msk.bf16.gmra.mxu1 %vm178_vm2, %v407_v23  ;;  %498 = vmatmul.msk.bf16.gmra.mxu3 %vm178_vm2, %v447_v33 }
  0x21   :  { %218 = vmatmul.bf16.vlgmr.msra.gmra.mxu0 %v395_v29  ;;  %238 = vmatmul.bf16.vlgmr.msra.gmra.mxu2 %v427_v30 }
  0x2f   :  { %494 = vmatmul.msk.bf16.gmra.mxu1 %vm178_vm2, %v415_v36  ;;  %499 = vmatmul.msk.bf16.gmra.mxu3 %vm178_vm2, %v455_v45 }
  0x31   :  { %223 = vmatmul.bf16.gmra.mxu0 %v403_v41  ;;  %243 = vmatmul.bf16.gmra.mxu2 %v435_v42 }
  0x3f   :  { %495 = vmatmul.msk.bf16.gmra.mxu1 %vm178_vm2, %v423_v48 }
  0x41   :  { %228 = vmatmul.bf16.gmra.mxu0 %v411_v53  ;;  %248 = vmatmul.bf16.gmra.mxu2 %v443_v54 }
  0x4f   :  { %496 = vmatmul.msk.bf16.gmra.mxu1 %vm178_vm2, %v431_v57 }
  0x51   :  { %233 = vmatmul.bf16.gmra.mxu0 %v419_v62  ;;  %253 = vmatmul.bf16.gmra.mxu2 %v451_v63 }
  0x8c   :  { %v268_v0 = vpop.f32.mrf.mxu1 }
  0x92   :  { %v293_v9 = vpop.f32.mrf.mxu3 }
  0x94   :  { %v270_v1 = vpop.f32.mrf.mxu1 }
  0x9a   :  { %v295_v15 = vpop.f32.mrf.mxu3 }
  0x9c   :  { %v273_v2 = vpop.f32.mrf.mxu1 }
  0x9e   :  { %v219_v3 = vpop.f32.mrf.mxu0 }
  0x9f   :  { %v269_v4 = vadd.f32 %v268_v0, %v219_v3 }
  0xa1   :  { %308 = vst [vmem:[%s759_s2] sm:$0xff] %v269_v4  ;;  %v346_v35 = vmul.f32 %v269_v4, %v269_v4 }
  0xa2   :  { %v298_v22 = vpop.f32.mrf.mxu3 }
  0xa4   :  { %v275_v5 = vpop.f32.mrf.mxu1  ;;  %v239_v6 = vpop.f32.mrf.mxu2 }
  0xa6   :  { %v221_v7 = vpop.f32.mrf.mxu0 }
  0xa7   :  { %v271_v8 = vadd.f32 %v270_v1, %v221_v7 }
  0xa9   :  { %309 = vst [vmem:[%s759_s2 + $0x8] sm:$0xff] %v271_v8  ;;  %v347_v32 = vmul.f32 %v271_v8, %v271_v8  ;;  %v324_v36 = vadd.f32 %v271_v8, %v269_v4 }
  0xaa   :  { %v300_v31 = vpop.f32.mrf.mxu3 }
  0xab   :  { %v362_v41 = vadd.f32 %v347_v32, %v346_v35 }
  0xac   :  { %v278_v10 = vpop.f32.mrf.mxu1  ;;  %v241_v11 = vpop.f32.mrf.mxu2 }
  0xae   :  { %v224_v12 = vpop.f32.mrf.mxu0 }
  0xaf   :  { %v274_v13 = vadd.f32 %v273_v2, %v224_v12 }
  0xb1   :  { %310 = vst [vmem:[%s759_s2 + $0x10] sm:$0xff] %v274_v13  ;;  %v348_v37 = vmul.f32 %v274_v13, %v274_v13  ;;  %v325_v42 = vadd.f32 %v324_v36, %v274_v13 }
  0xb2   :  { %v303_v48 = vpop.f32.mrf.mxu3 }
  0xb3   :  { %v363_v45 = vadd.f32 %v362_v41, %v348_v37 }
  0xb4   :  { %v280_v14 = vpop.f32.mrf.mxu1  ;;  %v244_v16 = vpop.f32.mrf.mxu2 }
  0xb5   :  { %v700_v18 = vadd.f32 %v293_v9, %v244_v16 }
  0xb6   :  { %v226_v17 = vpop.f32.mrf.mxu0 }
  0xb7   :  { %v276_v19 = vadd.f32 %v275_v5, %v226_v17  ;;  %318 = vst [vmem:[%s759_s2 + $0x50] sm:$0xff] %v700_v18 }
  0xb9   :  { %311 = vst [vmem:[%s759_s2 + $0x18] sm:$0xff] %v276_v19  ;;  %v349_v43 = vmul.f32 %v276_v19, %v276_v19  ;;  %v326_v46 = vadd.f32 %v325_v42, %v276_v19 }
  0xba   :  { %v305_v5 = vpop.f32.mrf.mxu3 }
  0xbb   :  { %v364_v49 = vadd.f32 %v363_v45, %v349_v43 }
  0xbc   :  { %v283_v20 = vpop.f32.mrf.mxu1  ;;  %v246_v21 = vpop.f32.mrf.mxu2 }
  0xbd   :  { %v709_v24 = vadd.f32 %v295_v15, %v246_v21 }
  0xbe   :  { %v229_v23 = vpop.f32.mrf.mxu0 }
  0xbf   :  { %v279_v25 = vadd.f32 %v278_v10, %v229_v23  ;;  %319 = vst [vmem:[%s759_s2 + $0x58] sm:$0xff] %v709_v24 }
  0xc1   :  { %312 = vst [vmem:[%s759_s2 + $0x20] sm:$0xff] %v279_v25  ;;  %v350_v47 = vmul.f32 %v279_v25, %v279_v25  ;;  %v327_v50 = vadd.f32 %v326_v46, %v279_v25 }
  0xc3   :  { %v365_v54 = vadd.f32 %v364_v49, %v350_v47 }
  0xc4   :  { %v285_v26 = vpop.f32.mrf.mxu1  ;;  %v249_v27 = vpop.f32.mrf.mxu2 }
  0xc5   :  { %v299_v29 = vadd.f32 %v298_v22, %v249_v27 }
  0xc6   :  { %v231_v28 = vpop.f32.mrf.mxu0 }
  0xc7   :  { %v281_v30 = vadd.f32 %v280_v14, %v231_v28  ;;  %320 = vst [vmem:[%s759_s2 + $0x60] sm:$0xff] %v299_v29  ;;  %v357_v14 = vmul.f32 %v709_v24, %v709_v24  ;;  %v358_v17 = vmul.f32 %v299_v29, %v299_v29 }
  0xc9   :  { %313 = vst [vmem:[%s759_s2 + $0x28] sm:$0xff] %v281_v30  ;;  %v351_v51 = vmul.f32 %v281_v30, %v281_v30  ;;  %v328_v55 = vadd.f32 %v327_v50, %v281_v30 }
  0xcb   :  { %v366_v60 = vadd.f32 %v365_v54, %v351_v51 }
  0xcc   :  { %v288_v33 = vpop.f32.mrf.mxu1  ;;  %v251_v38 = vpop.f32.mrf.mxu2 }
  0xcd   :  { %v289_v34 = vadd.f32 %v288_v33, %v239_v6  ;;  %v301_v40 = vadd.f32 %v300_v31, %v251_v38 }
  0xce   :  { %v234_v39 = vpop.f32.mrf.mxu0 }
  0xcf   :  { %316 = vst [vmem:[%s759_s2 + $0x40] sm:$0xff] %v289_v34  ;;  %v284_v44 = vadd.f32 %v283_v20, %v234_v39  ;;  %v354_v2 = vmul.f32 %v289_v34, %v289_v34  ;;  %v359_v21 = vmul.f32 %v301_v40, %v301_v40 }
  0xd0   :  { %321 = vst [vmem:[%s759_s2 + $0x68] sm:$0xff] %v301_v40 }
  0xd1   :  { %314 = vst [vmem:[%s759_s2 + $0x30] sm:$0xff] %v284_v44  ;;  %v352_v56 = vmul.f32 %v284_v44, %v284_v44  ;;  %v329_v61 = vadd.f32 %v328_v55, %v284_v44 }
  0xd3   :  { %v367_v63 = vadd.f32 %v366_v60, %v352_v56 }
  0xd4   :  { %v290_v52 = vpop.f32.mrf.mxu1  ;;  %v254_v57 = vpop.f32.mrf.mxu2 }
  0xd5   :  { %v291_v53 = vadd.f32 %v290_v52, %v241_v11  ;;  %v304_v59 = vadd.f32 %v303_v48, %v254_v57  ;;  %v356_v11 = vmul.f32 %v700_v18, %v700_v18 }
  0xd6   :  { %v236_v58 = vpop.f32.mrf.mxu0 }
  0xd7   :  { %317 = vst [vmem:[%s759_s2 + $0x48] sm:$0xff] %v291_v53  ;;  %v286_v62 = vadd.f32 %v285_v26, %v236_v58  ;;  %v355_v6 = vmul.f32 %v291_v53, %v291_v53  ;;  %v360_v26 = vmul.f32 %v304_v59, %v304_v59 }
  0xd8   :  { %322 = vst [vmem:[%s759_s2 + $0x70] sm:$0xff] %v304_v59 }
  0xd9   :  { %315 = vst [vmem:[%s759_s2 + $0x38] sm:$0xff] %v286_v62  ;;  %v330_v0 = vadd.f32 %v329_v61, %v286_v62  ;;  %v353_v1 = vmul.f32 %v286_v62, %v286_v62 }
  0xdb   :  { %v331_v3 = vadd.f32 %v330_v0, %v289_v34  ;;  %v368_v4 = vadd.f32 %v367_v63, %v353_v1 }
  0xdc   :  { %v256_v9 = vpop.f32.mrf.mxu2 }
  0xdd   :  { %v332_v7 = vadd.f32 %v331_v3, %v291_v53  ;;  %v369_v8 = vadd.f32 %v368_v4, %v354_v2  ;;  %v306_v10 = vadd.f32 %v305_v5, %v256_v9 }
  0xdf   :  { %v333_v12 = vadd.f32 %v332_v7, %v700_v18  ;;  %v370_v13 = vadd.f32 %v369_v8, %v355_v6  ;;  %323 = vst [vmem:[%s759_s2 + $0x78] sm:$0xff] %v306_v10  ;;  %v361_v30 = vmul.f32 %v306_v10, %v306_v10 }
  0xe1   :  { %v371_v15 = vadd.f32 %v370_v13, %v356_v11  ;;  %v334_v16 = vadd.f32 %v333_v12, %v709_v24 }
  0xe3   :  { %v335_v19 = vadd.f32 %v334_v16, %v299_v29  ;;  %v372_v20 = vadd.f32 %v371_v15, %v357_v14 }
  0xe5   :  { %v336_v22 = vadd.f32 %v335_v19, %v301_v40  ;;  %v373_v23 = vadd.f32 %v372_v20, %v358_v17 }
  0xe7   :  { %v337_v25 = vadd.f32 %v336_v22, %v304_v59  ;;  %v374_v18 = vadd.f32 %v373_v23, %v359_v21 }
  0xe9   :  { %v375_v27 = vadd.f32 %v374_v18, %v360_v26  ;;  %v338_v28 = vadd.f32 %v337_v25, %v306_v10 }
  0xeb   :  { %v339_v31 = vrot.slane %v338_v28, 4  ;;  %v376_v32 = vadd.f32 %v375_v27, %v361_v30 }
  0xed   :  { %v340_v33 = vadd.f32 %v339_v31, %v338_v28  ;;  %v377_v34 = vrot.slane %v376_v32, 4 }
  0xef   :  { %v341_v35 = vrot.slane %v340_v33, 2  ;;  %v378_v36 = vadd.f32 %v377_v34, %v376_v32 }
  0xf1   :  { %v342_v37 = vadd.f32 %v341_v35, %v340_v33  ;;  %v379_v24 = vrot.slane %v378_v36, 2 }
  0xf3   :  { %v343_v38 = vrot.slane %v342_v37, 1  ;;  %v380_v29 = vadd.f32 %v379_v24, %v378_v36 }
  0xf5   :  { %v344_v39 = vadd.f32 %v343_v38, %v342_v37  ;;  %v381_v41 = vrot.slane %v380_v29, 1 }
  0xf7   :  { %345 = vst [vmem:[%s760_s3] sm:$0x1] %v344_v39  ;;  %v382_v40 = vadd.f32 %v381_v41, %v380_v29 }
  0xf9   :  { %383 = vst [vmem:[%s760_s3 + $0x1] sm:$0x1] %v382_v40 }

// kernel: _fused_first_block.3
= control target key start
LH: loop header
LB: loop body
LE: loop exit
PB: predicated region body
PF: predicated region fallthrough
CT: control target
= control target key end

     0   :  { %s1013_s0 = inlined_call_operand.vmem [shape: f32[5,2,5,4,128], index: 0, kind: input, shape index: {}]   ;;  %s1014_s1 = inlined_call_operand.vmem [shape: f32[2,128], index: 1, kind: input, shape index: {}]   ;;  %s1015_s2 = inlined_call_operand.hbm [shape: f32[4,4,2,128], index: 2, kind: output, shape index: {}]  }
   0x1   :  { %v12_v0 = vld [vmem:[%s1013_s0] sm:$0x3]  ;;  %v28_v1 = vld [vmem:[%s1013_s0 + $0x2] sm:$0x3]  ;;  %v375_v2 = vld [vmem:[%s1013_s0 + $0x4] sm:$0x3] }
   0x2   :  { %v44_v3 = vmax.f32 %v12_v0, %v28_v1  ;;  %v391_v4 = vld [vmem:[%s1013_s0 + $0x14] sm:$0x3]  ;;  %v407_v6 = vld [vmem:[%s1013_s0 + $0x16] sm:$0x3]  ;;  %v13_v7 = vld [vmem:[%s1013_s0 + $0x4] sm:$0x3] }
   0x3   :  { %v29_v8 = vld [vmem:[%s1013_s0 + $0x6] sm:$0x3]  ;;  %v376_v11 = vld [vmem:[%s1013_s0 + $0x8] sm:$0x3]  ;;  %v423_v12 = vld [vmem:[%s1013_s0 + $0x18] sm:$0x3] }
   0x4   :  { %v77_v5 = vmax.f32 %v44_v3, %v375_v2  ;;  %v45_v10 = vmax.f32 %v13_v7, %v29_v8  ;;  %v392_v13 = vld [vmem:[%s1013_s0 + $0x18] sm:$0x3]  ;;  %v14_v16 = vld [vmem:[%s1013_s0 + $0x8] sm:$0x3]  ;;  %v30_v17 = vld [vmem:[%s1013_s0 + $0xa] sm:$0x3] }
   0x5   :  { %v439_v18 = vld [vmem:[%s1013_s0 + $0x28] sm:$0x3]  ;;  %v408_v19 = vld [vmem:[%s1013_s0 + $0x1a] sm:$0x3]  ;;  %v46_v20 = vmax.f32 %v14_v16, %v30_v17  ;;  %v377_v21 = vld [vmem:[%s1013_s0 + $0xc] sm:$0x3] }
   0x6   :  { %v110_v9 = vmax.f32 %v77_v5, %v391_v4  ;;  %v78_v15 = vmax.f32 %v45_v10, %v376_v11  ;;  %v455_v23 = vld [vmem:[%s1013_s0 + $0x2a] sm:$0x3]  ;;  %v393_v25 = vld [vmem:[%s1013_s0 + $0x1c] sm:$0x3]  ;;  %v471_v26 = vld [vmem:[%s1013_s0 + $0x2c] sm:$0x3] }
   0x7   :  { %v424_v27 = vld [vmem:[%s1013_s0 + $0x1c] sm:$0x3]  ;;  %v79_v28 = vmax.f32 %v46_v20, %v377_v21  ;;  %v15_v29 = vld [vmem:[%s1013_s0 + $0xc] sm:$0x3]  ;;  %v31_v30 = vld [vmem:[%s1013_s0 + $0xe] sm:$0x3] }
   0x8   :  { %v142_v14 = vmax.f32 %v110_v9, %v407_v6  ;;  %v111_v24 = vmax.f32 %v78_v15, %v392_v13  ;;  %v602_v32 = vld [vmem:[%s1014_s1] ss:$0 sm:$0xff]  ;;  %v409_v34 = vld [vmem:[%s1013_s0 + $0x1e] sm:$0x3]  ;;  %v47_v35 = vmax.f32 %v15_v29, %v31_v30  ;;  %v378_v36 = vld [vmem:[%s1013_s0 + $0x10] sm:$0x3] }
   0x9   :  { %v440_v37 = vld [vmem:[%s1013_s0 + $0x2c] sm:$0x3]  ;;  %v456_v38 = vld [vmem:[%s1013_s0 + $0x2e] sm:$0x3]  ;;  %v112_v39 = vmax.f32 %v79_v28, %v393_v25  ;;  %v394_v40 = vld [vmem:[%s1013_s0 + $0x20] sm:$0x3] }
   0xa   :  { %v175_v22 = vmax.f32 %v142_v14, %v423_v12  ;;  %v143_v33 = vmax.f32 %v111_v24, %v408_v19  ;;  %v622_v42 = vld [vmem:[%s1014_s1 + $0x1] ss:$0 sm:$0xff]  ;;  %v80_v45 = vmax.f32 %v47_v35, %v378_v36  ;;  %v16_v46 = vld [vmem:[%s1013_s0 + $0x28] sm:$0x3]  ;;  %v32_v47 = vld [vmem:[%s1013_s0 + $0x2a] sm:$0x3] }
   0xb   :  { %v425_v44 = vld [vmem:[%s1013_s0 + $0x20] sm:$0x3]  ;;  %v472_v48 = vld [vmem:[%s1013_s0 + $0x30] sm:$0x3]  ;;  %v144_v49 = vmax.f32 %v112_v39, %v409_v34  ;;  %v410_v50 = vld [vmem:[%s1013_s0 + $0x22] sm:$0x3]  ;;  %v48_v51 = vmax.f32 %v16_v46, %v32_v47 }
   0xc   :  { %v208_v31 = vmax.f32 %v175_v22, %v439_v18  ;;  %v176_v43 = vmax.f32 %v143_v33, %v424_v27  ;;  %v379_v52 = vld [vmem:[%s1013_s0 + $0x2c] sm:$0x3]  ;;  %v441_v55 = vld [vmem:[%s1013_s0 + $0x30] sm:$0x3]  ;;  %v457_v56 = vld [vmem:[%s1013_s0 + $0x32] sm:$0x3]  ;;  %v113_v57 = vmax.f32 %v80_v45, %v394_v40 }
   0xd   :  { %v395_v58 = vld [vmem:[%s1013_s0 + $0x3c] sm:$0x3]  ;;  %v177_v59 = vmax.f32 %v144_v49, %v425_v44  ;;  %v426_v60 = vld [vmem:[%s1013_s0 + $0x24] sm:$0x3]  ;;  %v81_v61 = vmax.f32 %v48_v51, %v379_v52  ;;  %v17_v62 = vld [vmem:[%s1013_s0 + $0x2c] sm:$0x3] }
   0xe   :  { %v240_v41 = vmax.f32 %v208_v31, %v455_v23  ;;  %v209_v54 = vmax.f32 %v176_v43, %v440_v37  ;;  %v33_v63 = vld [vmem:[%s1013_s0 + $0x2e] sm:$0x3]  ;;  %v473_v2 = vld [vmem:[%s1013_s0 + $0x34] sm:$0x3]  ;;  %v145_v3 = vmax.f32 %v113_v57, %v410_v50  ;;  %v411_v4 = vld [vmem:[%s1013_s0 + $0x3e] sm:$0x3] }
   0xf   :  { %v49_v5 = vmax.f32 %v17_v62, %v33_v63  ;;  %v380_v6 = vld [vmem:[%s1013_s0 + $0x30] sm:$0x3]  ;;  %v210_v7 = vmax.f32 %v177_v59, %v441_v55  ;;  %v442_v8 = vld [vmem:[%s1013_s0 + $0x34] sm:$0x3]  ;;  %v458_v9 = vld [vmem:[%s1013_s0 + $0x36] sm:$0x3]  ;;  %v114_v10 = vmax.f32 %v81_v61, %v395_v58 }
  0x10   :  { %v273_v53 = vmax.f32 %v240_v41, %v471_v26  ;;  %v241_v1 = vmax.f32 %v209_v54, %v456_v38  ;;  %v396_v11 = vld [vmem:[%s1013_s0 + $0x40] sm:$0x3]  ;;  %v178_v14 = vmax.f32 %v145_v3, %v426_v60  ;;  %v18_v17 = vld [vmem:[%s1013_s0 + $0x30] sm:$0x3]  ;;  %v34_v18 = vld [vmem:[%s1013_s0 + $0x32] sm:$0x3] }
  0x11   :  { %v427_v15 = vld [vmem:[%s1013_s0 + $0x40] sm:$0x3]  ;;  %v82_v16 = vmax.f32 %v49_v5, %v380_v6  ;;  %v242_v19 = vmax.f32 %v210_v7, %v457_v56  ;;  %v474_v20 = vld [vmem:[%s1013_s0 + $0x38] sm:$0x3]  ;;  %v146_v21 = vmax.f32 %v114_v10, %v411_v4  ;;  %v443_v22 = vld [vmem:[%s1013_s0 + $0x50] sm:$0x3]  ;;  %v50_v24 = vmax.f32 %v18_v17, %v34_v18 }
  0x12   :  { %v292_v0 = vsub.f32 %v273_v53, %v602_v32  ;;  %v274_v13 = vmax.f32 %v241_v1, %v472_v48  ;;  %v412_v23 = vld [vmem:[%s1013_s0 + $0x42] sm:$0x3]  ;;  %v381_v25 = vld [vmem:[%s1013_s0 + $0x34] sm:$0x3]  ;;  %v211_v28 = vmax.f32 %v178_v14, %v442_v8  ;;  %v459_v29 = vld [vmem:[%s1013_s0 + $0x52] sm:$0x3] }
  0x13   :  { %v115_v30 = vmax.f32 %v82_v16, %v396_v11  ;;  %v397_v31 = vld [vmem:[%s1013_s0 + $0x44] sm:$0x3]  ;;  %v275_v33 = vmax.f32 %v242_v19, %v473_v2  ;;  %v179_v34 = vmax.f32 %v146_v21, %v427_v15  ;;  %v83_v36 = vmax.f32 %v50_v24, %v381_v25  ;;  %v413_v37 = vld [vmem:[%s1013_s0 + $0x46] sm:$0x3]  ;;  %v19_v38 = vld [vmem:[%s1013_s0 + $0x34] sm:$0x3] }
  0x14   :  { %v309_v12 = vmul.f32 %v622_v42, %v292_v0  ;;  %v293_v27 = vsub.f32 %v274_v13, %v602_v32  ;;  %v428_v35 = vld [vmem:[%s1013_s0 + $0x44] sm:$0x3]  ;;  %v243_v40 = vmax.f32 %v211_v28, %v458_v9  ;;  %v35_v43 = vld [vmem:[%s1013_s0 + $0x36] sm:$0x3]  ;;  %v382_v44 = vld [vmem:[%s1013_s0 + $0x38] sm:$0x3] }
  0x15   :  { %v147_v41 = vmax.f32 %v115_v30, %v412_v23  ;;  %v294_v45 = vsub.f32 %v275_v33, %v602_v32  ;;  %v212_v46 = vmax.f32 %v179_v34, %v443_v22  ;;  %v475_v47 = vld [vmem:[%s1013_s0 + $0x54] sm:$0x3]  ;;  %v460_v49 = vld [vmem:[%s1013_s0 + $0x56] sm:$0x3]  ;;  %v116_v50 = vmax.f32 %v83_v36, %v397_v31  ;;  %v429_v55 = vld [vmem:[%s1013_s0 + $0x48] sm:$0x3] }
  0x16   :  { %v325_v26 = vmax.f32 %v309_v12, 0.0  ;;  %v310_v39 = vmul.f32 %v622_v42, %v293_v27  ;;  %v444_v48 = vld [vmem:[%s1013_s0 + $0x54] sm:$0x3]  ;;  %v51_v51 = vmax.f32 %v19_v38, %v35_v43  ;;  %v276_v53 = vmax.f32 %v243_v40, %v474_v20  ;;  %v398_v56 = vld [vmem:[%s1013_s0 + $0x48] sm:$0x3] }
  0x17   :  { %v180_v54 = vmax.f32 %v147_v41, %v428_v35  ;;  %v311_v57 = vmul.f32 %v622_v42, %v294_v45  ;;  %v244_v58 = vmax.f32 %v212_v46, %v459_v29  ;;  %v476_v59 = vld [vmem:[%s1013_s0 + $0x58] sm:$0x3]  ;;  %v148_v60 = vmax.f32 %v116_v50, %v413_v37  ;;  %v20_v63 = vld [vmem:[%s1013_s0 + $0x50] sm:$0x3]  ;;  %v36_v0 = vld [vmem:[%s1013_s0 + $0x52] sm:$0x3] }
  0x18   :  { %341 = vst [vmem:[#allocation2] sm:$0x3] %v325_v26  ;;  %v326_v52 = vmax.f32 %v310_v39, 0.0  ;;  %v445_v61 = vld [vmem:[%s1013_s0 + $0x58] sm:$0x3]  ;;  %v84_v62 = vmax.f32 %v51_v51, %v382_v44  ;;  %v295_v1 = vsub.f32 %v276_v53, %v602_v32  ;;  %v52_v4 = vmax.f32 %v20_v63, %v36_v0 }
  0x19   :  { %v213_v2 = vmax.f32 %v180_v54, %v444_v48  ;;  %v414_v3 = vld [vmem:[%s1013_s0 + $0x4a] sm:$0x3]  ;;  %v383_v5 = vld [vmem:[%s1013_s0 + $0x54] sm:$0x3]  ;;  %v327_v6 = vmax.f32 %v311_v57, 0.0  ;;  %v277_v7 = vmax.f32 %v244_v58, %v475_v47  ;;  %v181_v8 = vmax.f32 %v148_v60, %v429_v55 }
  0x1a   :  { %342 = vst [vmem:[#allocation2 + $0x2] sm:$0x3] %v326_v52  ;;  %v461_v9 = vld [vmem:[%s1013_s0 + $0x5a] sm:$0x3]  ;;  %v117_v10 = vmax.f32 %v84_v62, %v398_v56  ;;  %v399_v11 = vld [vmem:[%s1013_s0 + $0x64] sm:$0x3]  ;;  %v312_v12 = vmul.f32 %v622_v42, %v295_v1  ;;  %v85_v16 = vmax.f32 %v52_v4, %v383_v5 }
  0x1b   :  { %v245_v13 = vmax.f32 %v213_v2, %v460_v49  ;;  %v477_v14 = vld [vmem:[%s1013_s0 + $0x5c] sm:$0x3]  ;;  %v430_v15 = vld [vmem:[%s1013_s0 + $0x4c] sm:$0x3]  ;;  %v415_v17 = vld [vmem:[%s1013_s0 + $0x66] sm:$0x3]  ;;  %v296_v18 = vsub.f32 %v277_v7, %v602_v32  ;;  %v214_v19 = vmax.f32 %v181_v8, %v445_v61 }
  0x1c   :  { %343 = vst [vmem:[#allocation2 + $0x4] sm:$0x3] %v327_v6  ;;  %v149_v20 = vmax.f32 %v117_v10, %v414_v3  ;;  %v21_v21 = vld [vmem:[%s1013_s0 + $0x54] sm:$0x3]  ;;  %v37_v22 = vld [vmem:[%s1013_s0 + $0x56] sm:$0x3]  ;;  %v118_v26 = vmax.f32 %v85_v16, %v399_v11 }
  0x1d   :  { %v328_v23 = vmax.f32 %v312_v12, 0.0  ;;  %v278_v24 = vmax.f32 %v245_v13, %v476_v59  ;;  %v446_v25 = vld [vmem:[%s1013_s0 + $0x5c] sm:$0x3]  ;;  %v53_v27 = vmax.f32 %v21_v21, %v37_v22  ;;  %v384_v28 = vld [vmem:[%s1013_s0 + $0x58] sm:$0x3]  ;;  %v313_v29 = vmul.f32 %v622_v42, %v296_v18 }
  0x1e   :  { %v246_v30 = vmax.f32 %v214_v19, %v461_v9  ;;  %v182_v31 = vmax.f32 %v149_v20, %v430_v15  ;;  %v462_v33 = vld [vmem:[%s1013_s0 + $0x5e] sm:$0x3]  ;;  %v431_v34 = vld [vmem:[%s1013_s0 + $0x68] sm:$0x3]  ;;  %v150_v37 = vmax.f32 %v118_v26, %v415_v17  ;;  %v447_v38 = vld [vmem:[%s1013_s0 + $0x78] sm:$0x3] }
  0x1f   :  { %v400_v35 = vld [vmem:[%s1013_s0 + $0x68] sm:$0x3]  ;;  %344 = vst [vmem:[#allocation2 + $0x6] sm:$0x3] %v328_v23  ;;  %v297_v36 = vsub.f32 %v278_v24, %v602_v32  ;;  %v86_v39 = vmax.f32 %v53_v27, %v384_v28  ;;  %v416_v40 = vld [vmem:[%s1013_s0 + $0x6a] sm:$0x3] }
  0x20   :  { %v329_v41 = vmax.f32 %v313_v29, 0.0  ;;  %v279_v43 = vmax.f32 %v246_v30, %v477_v14  ;;  %v215_v44 = vmax.f32 %v182_v31, %v446_v25  ;;  %v22_v45 = vld [vmem:[%s1013_s0 + $0x58] sm:$0x3]  ;;  %v38_v46 = vld [vmem:[%s1013_s0 + $0x5a] sm:$0x3]  ;;  %v183_v49 = vmax.f32 %v150_v37, %v431_v34 }
  0x21   :  { %v314_v47 = vmul.f32 %v622_v42, %v297_v36  ;;  %v478_v48 = vld [vmem:[%s1013_s0 + $0x60] sm:$0x3]  ;;  %v463_v50 = vld [vmem:[%s1013_s0 + $0x7a] sm:$0x3]  ;;  %v119_v51 = vmax.f32 %v86_v39, %v400_v35  ;;  %v54_v52 = vmax.f32 %v22_v45, %v38_v46  ;;  %v385_v53 = vld [vmem:[%s1013_s0 + $0x5c] sm:$0x3] }
  0x22   :  { %345 = vst [vmem:[#allocation2 + $0x8] sm:$0x3] %v329_v41  ;;  %v298_v54 = vsub.f32 %v279_v43, %v602_v32  ;;  %v247_v55 = vmax.f32 %v215_v44, %v462_v33  ;;  %v479_v56 = vld [vmem:[%s1013_s0 + $0x7c] sm:$0x3]  ;;  %v432_v57 = vld [vmem:[%s1013_s0 + $0x6c] sm:$0x3]  ;;  %v216_v60 = vmax.f32 %v183_v49, %v447_v38 }
  0x23   :  { %v401_v58 = vld [vmem:[%s1013_s0 + $0x6c] sm:$0x3]  ;;  %v330_v59 = vmax.f32 %v314_v47, 0.0  ;;  %v151_v61 = vmax.f32 %v119_v51, %v416_v40  ;;  %v448_v62 = vld [vmem:[%s1013_s0 + $0x7c] sm:$0x3]  ;;  %v87_v63 = vmax.f32 %v54_v52, %v385_v53 }
  0x24   :  { %v417_v0 = vld [vmem:[%s1013_s0 + $0x6e] sm:$0x3]  ;;  %v315_v1 = vmul.f32 %v622_v42, %v298_v54  ;;  %v280_v2 = vmax.f32 %v247_v55, %v478_v48  ;;  %v23_v3 = vld [vmem:[%s1013_s0 + $0x5c] sm:$0x3]  ;;  %v39_v4 = vld [vmem:[%s1013_s0 + $0x5e] sm:$0x3]  ;;  %v248_v6 = vmax.f32 %v216_v60, %v463_v50 }
  0x25   :  { %v386_v5 = vld [vmem:[%s1013_s0 + $0x60] sm:$0x3]  ;;  %346 = vst [vmem:[#allocation2 + $0xa] sm:$0x3] %v330_v59  ;;  %v184_v7 = vmax.f32 %v151_v61, %v432_v57  ;;  %v464_v8 = vld [vmem:[%s1013_s0 + $0x7e] sm:$0x3]  ;;  %v120_v9 = vmax.f32 %v87_v63, %v401_v58  ;;  %v55_v10 = vmax.f32 %v23_v3, %v39_v4 }
  0x26   :  { %v331_v11 = vmax.f32 %v315_v1, 0.0  ;;  %v299_v12 = vsub.f32 %v280_v2, %v602_v32  ;;  %v433_v13 = vld [vmem:[%s1013_s0 + $0x70] sm:$0x3]  ;;  %v281_v15 = vmax.f32 %v248_v6, %v479_v56  ;;  %v480_v17 = vld [vmem:[%s1013_s0 + $0x80] sm:$0x3] }
  0x27   :  { %v402_v14 = vld [vmem:[%s1013_s0 + $0x70] sm:$0x3]  ;;  %v217_v16 = vmax.f32 %v184_v7, %v448_v62  ;;  %v152_v18 = vmax.f32 %v120_v9, %v417_v0  ;;  %v449_v19 = vld [vmem:[%s1013_s0 + $0x80] sm:$0x3]  ;;  %v88_v20 = vmax.f32 %v55_v10, %v386_v5  ;;  %v24_v21 = vld [vmem:[%s1013_s0 + $0x78] sm:$0x3] }
  0x28   :  { %347 = vst [vmem:[#allocation2 + $0xc] sm:$0x3] %v331_v11  ;;  %v316_v22 = vmul.f32 %v622_v42, %v299_v12  ;;  %v418_v23 = vld [vmem:[%s1013_s0 + $0x72] sm:$0x3]  ;;  %v40_v24 = vld [vmem:[%s1013_s0 + $0x7a] sm:$0x3]  ;;  %v300_v25 = vsub.f32 %v281_v15, %v602_v32 }
  0x29   :  { %v249_v26 = vmax.f32 %v217_v16, %v464_v8  ;;  %v185_v27 = vmax.f32 %v152_v18, %v433_v13  ;;  %v465_v28 = vld [vmem:[%s1013_s0 + $0x82] sm:$0x3]  ;;  %v121_v29 = vmax.f32 %v88_v20, %v402_v14  ;;  %v387_v30 = vld [vmem:[%s1013_s0 + $0x7c] sm:$0x3]  ;;  %v481_v33 = vld [vmem:[%s1013_s0 + $0x84] sm:$0x3]  ;;  %v56_v35 = vmax.f32 %v24_v21, %v40_v24 }
  0x2a   :  { %v332_v31 = vmax.f32 %v316_v22, 0.0  ;;  %v434_v34 = vld [vmem:[%s1013_s0 + $0x74] sm:$0x3]  ;;  %v317_v36 = vmul.f32 %v622_v42, %v300_v25  ;;  %v403_v40 = vld [vmem:[%s1013_s0 + $0x8c] sm:$0x3] }
  0x2b   :  { %v282_v37 = vmax.f32 %v249_v26, %v480_v17  ;;  %v218_v38 = vmax.f32 %v185_v27, %v449_v19  ;;  %v153_v39 = vmax.f32 %v121_v29, %v418_v23  ;;  %v25_v41 = vld [vmem:[%s1013_s0 + $0x7c] sm:$0x3]  ;;  %v41_v43 = vld [vmem:[%s1013_s0 + $0x7e] sm:$0x3]  ;;  %v450_v44 = vld [vmem:[%s1013_s0 + $0x84] sm:$0x3]  ;;  %v89_v45 = vmax.f32 %v56_v35, %v387_v30 }
  0x2c   :  { %348 = vst [vmem:[#allocation2 + $0xe] sm:$0x3] %v332_v31  ;;  %v57_v46 = vmax.f32 %v25_v41, %v41_v43  ;;  %v388_v47 = vld [vmem:[%s1013_s0 + $0x80] sm:$0x3]  ;;  %v333_v48 = vmax.f32 %v317_v36, 0.0 }
  0x2d   :  { %v301_v49 = vsub.f32 %v282_v37, %v602_v32  ;;  %v250_v50 = vmax.f32 %v218_v38, %v465_v28  ;;  %v186_v51 = vmax.f32 %v153_v39, %v434_v34  ;;  %v419_v52 = vld [vmem:[%s1013_s0 + $0x8e] sm:$0x3]  ;;  %v404_v53 = vld [vmem:[%s1013_s0 + $0x90] sm:$0x3]  ;;  %v466_v54 = vld [vmem:[%s1013_s0 + $0x86] sm:$0x3]  ;;  %v122_v55 = vmax.f32 %v89_v45, %v403_v40 }
  0x2e   :  { %v435_v56 = vld [vmem:[%s1013_s0 + $0x90] sm:$0x3]  ;;  %v90_v57 = vmax.f32 %v57_v46, %v388_v47  ;;  %v420_v58 = vld [vmem:[%s1013_s0 + $0x92] sm:$0x3]  ;;  %349 = vst [vmem:[#allocation2 + $0x10] sm:$0x3] %v333_v48 }
  0x2f   :  { %v318_v59 = vmul.f32 %v622_v42, %v301_v49  ;;  %v283_v60 = vmax.f32 %v250_v50, %v481_v33  ;;  %v219_v61 = vmax.f32 %v186_v51, %v450_v44  ;;  %v26_v62 = vld [vmem:[%s1013_s0 + $0x80] sm:$0x3]  ;;  %v42_v63 = vld [vmem:[%s1013_s0 + $0x82] sm:$0x3]  ;;  %v482_v0 = vld [vmem:[%s1013_s0 + $0x88] sm:$0x3]  ;;  %v154_v1 = vmax.f32 %v122_v55, %v419_v52 }
  0x30   :  { %v451_v2 = vld [vmem:[%s1013_s0 + $0xa0] sm:$0x3]  ;;  %v123_v3 = vmax.f32 %v90_v57, %v404_v53  ;;  %v58_v4 = vmax.f32 %v26_v62, %v42_v63  ;;  %v389_v5 = vld [vmem:[%s1013_s0 + $0x84] sm:$0x3]  ;;  %v467_v9 = vld [vmem:[%s1013_s0 + $0xa2] sm:$0x3] }
  0x31   :  { %v334_v6 = vmax.f32 %v318_v59, 0.0  ;;  %v302_v7 = vsub.f32 %v283_v60, %v602_v32  ;;  %v251_v8 = vmax.f32 %v219_v61, %v466_v54  ;;  %v436_v10 = vld [vmem:[%s1013_s0 + $0x94] sm:$0x3]  ;;  %v187_v12 = vmax.f32 %v154_v1, %v435_v56  ;;  %v452_v14 = vld [vmem:[%s1013_s0 + $0xa4] sm:$0x3] }
  0x32   :  { %v405_v11 = vld [vmem:[%s1013_s0 + $0x94] sm:$0x3]  ;;  %v155_v13 = vmax.f32 %v123_v3, %v420_v58  ;;  %v91_v15 = vmax.f32 %v58_v4, %v389_v5  ;;  %v421_v16 = vld [vmem:[%s1013_s0 + $0x96] sm:$0x3]  ;;  %v27_v17 = vld [vmem:[%s1013_s0 + $0x84] sm:$0x3] }
  0x33   :  { %350 = vst [vmem:[#allocation2 + $0x12] sm:$0x3] %v334_v6  ;;  %v319_v18 = vmul.f32 %v622_v42, %v302_v7  ;;  %v284_v19 = vmax.f32 %v251_v8, %v482_v0  ;;  %v43_v20 = vld [vmem:[%s1013_s0 + $0x86] sm:$0x3]  ;;  %v390_v21 = vld [vmem:[%s1013_s0 + $0x88] sm:$0x3]  ;;  %v220_v22 = vmax.f32 %v187_v12, %v451_v2 }
  0x34   :  { %v483_v23 = vld [vmem:[%s1013_s0 + $0xa4] sm:$0x3]  ;;  %v188_v24 = vmax.f32 %v155_v13, %v436_v10  ;;  %v468_v25 = vld [vmem:[%s1013_s0 + $0xa6] sm:$0x3]  ;;  %v124_v26 = vmax.f32 %v91_v15, %v405_v11  ;;  %v59_v27 = vmax.f32 %v27_v17, %v43_v20  ;;  %v437_v30 = vld [vmem:[%s1013_s0 + $0x98] sm:$0x3] }
  0x35   :  { %v335_v28 = vmax.f32 %v319_v18, 0.0  ;;  %v303_v29 = vsub.f32 %v284_v19, %v602_v32  ;;  %v406_v31 = vld [vmem:[%s1013_s0 + $0x98] sm:$0x3]  ;;  %v252_v33 = vmax.f32 %v220_v22, %v467_v9  ;;  %v484_v35 = vld [vmem:[%s1013_s0 + $0xa8] sm:$0x3] }
  0x36   :  { %v221_v34 = vmax.f32 %v188_v24, %v452_v14  ;;  %v156_v36 = vmax.f32 %v124_v26, %v421_v16  ;;  %v92_v37 = vmax.f32 %v59_v27, %v390_v21 }
  0x37   :  { %7 = vsyncpa [#allocation3], 0  ;;  %351 = vst [vmem:[#allocation2 + $0x14] sm:$0x3] %v335_v28  ;;  %v320_v38 = vmul.f32 %v622_v42, %v303_v29  ;;  %v453_v39 = vld [vmem:[%s1013_s0 + $0xa8] sm:$0x3]  ;;  %v285_v41 = vmax.f32 %v252_v33, %v483_v23 }
  0x38   :  { %v422_v40 = vld [vmem:[%s1013_s0 + $0x9a] sm:$0x3]  ;;  %v253_v43 = vmax.f32 %v221_v34, %v468_v25  ;;  %v189_v44 = vmax.f32 %v156_v36, %v437_v30  ;;  %v125_v45 = vmax.f32 %v92_v37, %v406_v31  ;;  %v469_v47 = vld [vmem:[%s1013_s0 + $0xaa] sm:$0x3]  ;;  %v438_v48 = vld [vmem:[%s1013_s0 + $0x9c] sm:$0x3] }
  0x39   :  { %v336_v46 = vmax.f32 %v320_v38, 0.0  ;;  %v304_v49 = vsub.f32 %v285_v41, %v602_v32  ;;  %v485_v53 = vld [vmem:[%s1013_s0 + $0xac] sm:$0x3]  ;;  %v470_v59 = vld [vmem:[%s1013_s0 + $0xae] sm:$0x3]  ;;  %s518_s13 = smov [#allocation2]  }
  0x3a   :  { %v286_v50 = vmax.f32 %v253_v43, %v484_v35  ;;  %v222_v51 = vmax.f32 %v189_v44, %v453_v39  ;;  %v157_v52 = vmax.f32 %v125_v45, %v422_v40  ;;  %v454_v54 = vld [vmem:[%s1013_s0 + $0xac] sm:$0x3]  ;;  %v486_v0 = vld [vmem:[%s1013_s0 + $0xb0] sm:$0x3]  ;;  %s361_s14 = sshll.u32 %s518_s13, 4  ;;  %s363_s1 = sshll.u32 %s1015_s2, 4  ;;  %s362_s14 = int_to_ptr.vmem [resolvable:$true] %s361_s14  ;;  %s364_s1 = int_to_ptr.hbm [resolvable:$true] %s363_s1 }
  0x3b   :  { %352 = vst [vmem:[#allocation2 + $0x16] sm:$0x3] %v336_v46  ;;  %v321_v55 = vmul.f32 %v622_v42, %v304_v49  ;;  %s519_s0 = smov 32   ;;  %s520_s17 = smov 2  }
  0x3c   :  { %v305_v56 = vsub.f32 %v286_v50, %v602_v32  ;;  %v254_v57 = vmax.f32 %v222_v51, %v469_v47  ;;  %v190_v58 = vmax.f32 %v157_v52, %v438_v48 }
  0x3d   :  { %v337_v60 = vmax.f32 %v321_v55, 0.0 }
  0x3e   :  { %v322_v61 = vmul.f32 %v622_v42, %v305_v56  ;;  %v287_v62 = vmax.f32 %v254_v57, %v485_v53  ;;  %v223_v63 = vmax.f32 %v190_v58, %v454_v54 }
  0x3f   :  { %353 = vst [vmem:[#allocation2 + $0x18] sm:$0x3] %v337_v60 }
  0x40   :  { %v338_v1 = vmax.f32 %v322_v61, 0.0  ;;  %v306_v2 = vsub.f32 %v287_v62, %v602_v32  ;;  %v255_v3 = vmax.f32 %v223_v63, %v470_v59 }
  0x42   :  { %354 = vst [vmem:[#allocation2 + $0x1a] sm:$0x3] %v338_v1  ;;  %v323_v4 = vmul.f32 %v622_v42, %v306_v2  ;;  %v288_v5 = vmax.f32 %v255_v3, %v486_v0 }
  0x44   :  { %v339_v6 = vmax.f32 %v323_v4, 0.0  ;;  %v307_v7 = vsub.f32 %v288_v5, %v602_v32 }
  0x46   :  { %355 = vst [vmem:[#allocation2 + $0x1c] sm:$0x3] %v339_v6  ;;  %v324_v8 = vmul.f32 %v622_v42, %v307_v7 }
  0x48   :  { %v340_v9 = vmax.f32 %v324_v8, 0.0 }
  0x4a   :  { %356 = vst [vmem:[#allocation2 + $0x1e] sm:$0x3] %v340_v9 }
  0x4b   :  { %369 = dma.vmem_to_hbm [thread:$0]  %s362_s14, 512, %s364_s1, [#allocation3], %s519_s0, %s519_s0, %s520_s17  }
  0x4c   :  { %516 = dma.done.wait [#allocation3], 512  }
  0x4d   :  { %517 = vsyncadd [#allocation3], 4294966784 }
  0x4e   :  { %374 = vsyncpa [#allocation3], 1 }

</bundles_post_ra>
